<compile_context>
chip_gen: v6e
topology: v6e:2x2x1
jax: 0.10.0
libtpu: 0.0.40
codegen_flags: <defaults>
</compile_context>

<pallas_src>
import jax
import jax.numpy as jnp
from jax.experimental import pallas as pl
from jax.experimental.pallas import tpu as pltpu


# ----------------------------------------------------------------------------
# Helpers
# ----------------------------------------------------------------------------
def _round_up(n, m):
    return ((n + m - 1) // m) * m


def _pick_batch_tile(batch, stream_row_bytes, budget_bytes, max_tile):
    """Largest layout-legal batch tile whose double-buffered streamed working set
    fits `budget_bytes`; capped so the grid has >= 2 steps whenever batch allows
    (keeps both v7x TensorCores busy)."""
    if batch <= 8:
        # single block equal to the full batch dim is always layout-legal
        return batch
    tb = (budget_bytes // max(stream_row_bytes, 1)) // 8 * 8
    tb = max(8, min(max_tile, tb))
    if batch >= 16:
        # cap so grid >= 2 (v7x megacore: two TensorCores share the parallel axis)
        tb = min(tb, _round_up(-(-batch // 2), 8))
    tb = min(tb, batch // 8 * 8)   # multiple of 8, never larger than the array
    return tb


# ----------------------------------------------------------------------------
# Kernels
# ----------------------------------------------------------------------------
def _normalize_and_store(logits, logits_ref, logp_ref):
    """Write raw logits and Categorical(logits=...)-normalized log-probs."""
    logits_ref[...] = logits.astype(logits_ref.dtype)
    m = jnp.max(logits, axis=-1, keepdims=True)
    lse = m + jnp.log(jnp.sum(jnp.exp(logits - m), axis=-1, keepdims=True))
    logp_ref[...] = (logits - lse).astype(logp_ref.dtype)


def _categorical_linear_kernel(x_ref, wt_ref, b_ref, logits_ref, logp_ref):
    # x: [TB, I] (streamed)   wt: [I, O] (resident)   b: [1, O] (resident)
    logits = jnp.dot(x_ref[...], wt_ref[...],
                     preferred_element_type=jnp.float32) + b_ref[...]
    _normalize_and_store(logits, logits_ref, logp_ref)


def _categorical_hyper_kernel(x_ref, w_ref, b_ref, logits_ref, logp_ref):
    # x: [TB, I]   w: [TB, O, I] (original hypernet layout, no HBM transpose)
    # Batched MXU contraction over I (flash-attention-style dot_general):
    #   [TB, 1, I] x [TB, O, I] --contract I, batch TB--> [TB, 1, O]
    x3 = x_ref[...][:, None, :]
    logits3 = jax.lax.dot_general(
        x3, w_ref[...],
        dimension_numbers=(((2,), (2,)), ((0,), (0,))),
        preferred_element_type=jnp.float32)
    logits = logits3[:, 0, :] + b_ref[...]
    _normalize_and_store(logits, logits_ref, logp_ref)


def _categorical_scaled_kernel(x_ref, wt_ref, s_ref, b_ref, logits_ref, logp_ref):
    # x: [TB, I]   wt: [I, O] (resident)   s, b: [TB, O] (streamed)
    mm = jnp.dot(x_ref[...], wt_ref[...], preferred_element_type=jnp.float32)
    logits = mm * s_ref[...] + b_ref[...]
    _normalize_and_store(logits, logits_ref, logp_ref)


# ----------------------------------------------------------------------------
# Wrappers
# ----------------------------------------------------------------------------
@jax.jit
def categorical_forward(x, weight, bias):
    """Path A: shared nn.Linear parameters. Returns (raw_logits, log_probs)."""
    B, I = x.shape
    O = weight.shape[0]

    x = x.astype(jnp.float32)
    wt = weight.astype(jnp.float32).T          # [I, O]; tiny one-time copy
    b = bias.astype(jnp.float32).reshape(1, O)

    # streamed bytes per batch row (x2 for double buffering): x + two outputs
    stream_row_bytes = 2 * (I + 2 * O) * 4
    TB = _pick_batch_tile(B, stream_row_bytes, budget_bytes=16 << 20, max_tile=2048)

    logits, logp = pl.pallas_call(
        _categorical_linear_kernel,
        grid=(pl.cdiv(B, TB),),
        in_specs=[
            pl.BlockSpec((TB, I), lambda i: (i, 0)),   # x: streamed per tile
            pl.BlockSpec((I, O), lambda i: (0, 0)),    # W.T: resident
            pl.BlockSpec((1, O), lambda i: (0, 0)),    # bias: resident
        ],
        out_specs=(
            pl.BlockSpec((TB, O), lambda i: (i, 0)),
            pl.BlockSpec((TB, O), lambda i: (i, 0)),
        ),
        out_shape=(
            jax.ShapeDtypeStruct((B, O), jnp.float32),
            jax.ShapeDtypeStruct((B, O), jnp.float32),
        ),
        compiler_params=pltpu.CompilerParams(
            dimension_semantics=("parallel",),
            vmem_limit_bytes=32 * 1024 * 1024,
        ),
    )(x, wt, b)
    return logits, logp


@jax.jit
def categorical_forward_hypernet(x, weight, bias):
    """Path B: per-sample weight [B, O, I] / bias [B, O]."""
    B, I = x.shape
    O = weight.shape[1]

    x = x.astype(jnp.float32)
    w = weight.astype(jnp.float32)   # [B, O, I] streamed as-is (no HBM transpose)
    b = bias.astype(jnp.float32)     # [B, O]

    # streamed bytes per batch row (x2 double buffer): per-sample W slab dominates
    stream_row_bytes = 2 * (O * I + I + 3 * O) * 4
    TB = _pick_batch_tile(B, stream_row_bytes, budget_bytes=16 << 20, max_tile=128)

    logits, logp = pl.pallas_call(
        _categorical_hyper_kernel,
        grid=(pl.cdiv(B, TB),),
        in_specs=[
            pl.BlockSpec((TB, I), lambda i: (i, 0)),
            pl.BlockSpec((TB, O, I), lambda i: (i, 0, 0)),
            pl.BlockSpec((TB, O), lambda i: (i, 0)),
        ],
        out_specs=(
            pl.BlockSpec((TB, O), lambda i: (i, 0)),
            pl.BlockSpec((TB, O), lambda i: (i, 0)),
        ),
        out_shape=(
            jax.ShapeDtypeStruct((B, O), jnp.float32),
            jax.ShapeDtypeStruct((B, O), jnp.float32),
        ),
        compiler_params=pltpu.CompilerParams(
            dimension_semantics=("parallel",),
            vmem_limit_bytes=32 * 1024 * 1024,
        ),
    )(x, w, b)
    return logits, logp


@jax.jit
def categorical_forward_scaled(x, weight, scaling, bias):
    """Path C: logits = (x @ W.T) * scaling + bias (linear bias dropped)."""
    B, I = x.shape
    O = weight.shape[0]

    x = x.astype(jnp.float32)
    wt = weight.astype(jnp.float32).T
    # Per-sample scaling/bias ([B, O]) pass through unchanged (broadcast_to is a
    # no-op then).  TODO(synk): if scaling/bias are per-output [O] in practice,
    # pass them as resident (1, O) blocks instead of materializing [B, O].
    scaling = jnp.broadcast_to(scaling.astype(jnp.float32), (B, O))
    bias = jnp.broadcast_to(bias.astype(jnp.float32), (B, O))

    stream_row_bytes = 2 * (I + 4 * O) * 4
    TB = _pick_batch_tile(B, stream_row_bytes, budget_bytes=16 << 20, max_tile=2048)

    logits, logp = pl.pallas_call(
        _categorical_scaled_kernel,
        grid=(pl.cdiv(B, TB),),
        in_specs=[
            pl.BlockSpec((TB, I), lambda i: (i, 0)),
            pl.BlockSpec((I, O), lambda i: (0, 0)),    # W.T resident
            pl.BlockSpec((TB, O), lambda i: (i, 0)),
            pl.BlockSpec((TB, O), lambda i: (i, 0)),
        ],
        out_specs=(
            pl.BlockSpec((TB, O), lambda i: (i, 0)),
            pl.BlockSpec((TB, O), lambda i: (i, 0)),
        ),
        out_shape=(
            jax.ShapeDtypeStruct((B, O), jnp.float32),
            jax.ShapeDtypeStruct((B, O), jnp.float32),
        ),
        compiler_params=pltpu.CompilerParams(
            dimension_semantics=("parallel",),
            vmem_limit_bytes=32 * 1024 * 1024,
        ),
    )(x, wt, scaling, bias)
    return logits, logp


# ----------------------------------------------------------------------------
# Deterministic parameter init (matches nn.init.orthogonal_ + zero bias)
# ----------------------------------------------------------------------------
def orthogonal_init(key, shape, gain=1.0):
    rows, cols = shape
    a = jax.random.normal(key, (rows, cols), dtype=jnp.float32)
    flat = a.T if rows < cols else a
    q, r = jnp.linalg.qr(flat)
    q = q * jnp.sign(jnp.diag(r))  # sign correction (torch convention)
    if rows < cols:
        q = q.T
    return (gain * q).astype(jnp.float32)


# ----------------------------------------------------------------------------
# Pure-JAX references for sanity checking
# ----------------------------------------------------------------------------
def _ref_linear(x, w, b):
    logits = x @ w.T + b
    logp = logits - jax.scipy.special.logsumexp(logits, axis=-1, keepdims=True)
    return logits, logp


def _ref_hyper(x, w, b):
    logits = jnp.einsum("bi,boi->bo", x, w) + b
    logp = logits - jax.scipy.special.logsumexp(logits, axis=-1, keepdims=True)
    return logits, logp


def _ref_scaled(x, w, scaling, bias):
    logits = (x @ w.T) * scaling + bias
    logp = logits - jax.scipy.special.logsumexp(logits, axis=-1, keepdims=True)
    return logits, logp


if __name__ == "__main__":
    B, NUM_INPUTS, NUM_OUTPUTS = 8, 32, 16
    GAIN = 0.01

    key = jax.random.PRNGKey(0)
    k_x, k_w, k_hw, k_hb, k_s, k_b = jax.random.split(key, 6)

    x = jax.random.normal(k_x, (B, NUM_INPUTS), dtype=jnp.float32)

    # Module parameters: orthogonal weight (gain), zero bias.
    weight = orthogonal_init(k_w, (NUM_OUTPUTS, NUM_INPUTS), gain=GAIN)
    bias = jnp.zeros((NUM_OUTPUTS,), dtype=jnp.float32)

    # --- Path A: standard nn.Linear ---
    logits, log_probs = categorical_forward(x, weight, bias)
    jax.block_until_ready((logits, log_probs))
    ref_logits, ref_logp = _ref_linear(x, weight, bias)
    assert jnp.allclose(logits, ref_logits, atol=1e-5, rtol=1e-5)
    assert jnp.allclose(log_probs, ref_logp, atol=1e-5, rtol=1e-5)

    # --- Path B: hypernet (per-sample weights) ---
    hyper_w = jax.random.normal(k_hw, (B, NUM_OUTPUTS, NUM_INPUTS),
                                dtype=jnp.float32) * 0.1
    hyper_b = jax.random.normal(k_hb, (B, NUM_OUTPUTS), dtype=jnp.float32) * 0.1
    h_logits, h_logp = categorical_forward_hypernet(x, hyper_w, hyper_b)
    jax.block_until_ready((h_logits, h_logp))
    ref_hl, ref_hlp = _ref_hyper(x, hyper_w, hyper_b)
    assert jnp.allclose(h_logits, ref_hl, atol=1e-5, rtol=1e-5)
    assert jnp.allclose(h_logp, ref_hlp, atol=1e-5, rtol=1e-5)

    # --- Path C: shared weight with per-sample scaling + bias ---
    scaling = jax.random.normal(k_s, (B, NUM_OUTPUTS), dtype=jnp.float32) * 0.5 + 1.0
    sc_bias = jax.random.normal(k_b, (B, NUM_OUTPUTS), dtype=jnp.float32) * 0.1
    s_logits, s_logp = categorical_forward_scaled(x, weight, scaling, sc_bias)
    jax.block_until_ready((s_logits, s_logp))
    ref_sl, ref_slp = _ref_scaled(x, weight, scaling, sc_bias)
    assert jnp.allclose(s_logits, ref_sl, atol=1e-5, rtol=1e-5)
    assert jnp.allclose(s_logp, ref_slp, atol=1e-5, rtol=1e-5)

    # TODO(synk): FixedCategorical.sample()/entropy() are distribution-object methods,
    # not part of the forward hot path; only logits / normalized log-probs are in-kernel.

    print("KERNEL_OK")
</pallas_src>

<mosaic_0001>
module attributes {stable_mosaic.version = 11 : i64} {
  func.func @_categorical_linear_kernel(%arg0: i32, %arg1: memref<8x32xf32, #tpu.memory_space<vmem>>, %arg2: memref<32x16xf32, #tpu.memory_space<vmem>>, %arg3: memref<1x16xf32, #tpu.memory_space<vmem>>, %arg4: memref<8x16xf32, #tpu.memory_space<vmem>>, %arg5: memref<8x16xf32, #tpu.memory_space<vmem>>) attributes {dimension_semantics = [#tpu.dimension_semantics<parallel>], iteration_bounds = array<i64: 1>, scalar_prefetch = 0 : i64, scratch_operands = 0 : i64, tpu.core_type = #tpu.core_type<tc>, window_params = [{transform_indices = @transform_0, window_bounds = array<i64: 8, 32>}, {pipeline_mode = #tpu.pipeline_mode<synchronous>, transform_indices = @transform_1, window_bounds = array<i64: 32, 16>}, {pipeline_mode = #tpu.pipeline_mode<synchronous>, transform_indices = @transform_2, window_bounds = array<i64: 1, 16>}, {transform_indices = @transform_3, window_bounds = array<i64: 8, 16>}, {transform_indices = @transform_4, window_bounds = array<i64: 8, 16>}]} {
    %c0 = arith.constant 0 : index
    %c0_0 = arith.constant 0 : index
    %0 = vector.load %arg1[%c0, %c0_0] : memref<8x32xf32, #tpu.memory_space<vmem>>, vector<8x32xf32>
    %c0_1 = arith.constant 0 : index
    %c0_2 = arith.constant 0 : index
    %1 = vector.load %arg2[%c0_1, %c0_2] : memref<32x16xf32, #tpu.memory_space<vmem>>, vector<32x16xf32>
    %cst = arith.constant dense<0.000000e+00> : vector<8x16xf32>
    %2 = tpu.matmul %0, %1, %cst {dimension_numbers = #tpu.dot_dimension_numbers<[1], [0], [0], [1], [0, 0, 1, 1], [], []>} : vector<8x32xf32>, vector<32x16xf32>, vector<8x16xf32> -> vector<8x16xf32>
    %c0_3 = arith.constant 0 : index
    %c0_4 = arith.constant 0 : index
    %3 = vector.load %arg3[%c0_3, %c0_4] : memref<1x16xf32, #tpu.memory_space<vmem>>, vector<1x16xf32>
    %4 = vector.broadcast %3 : vector<1x16xf32> to vector<8x16xf32>
    %5 = arith.addf %2, %4 : vector<8x16xf32>
    %c0_5 = arith.constant 0 : index
    %c0_6 = arith.constant 0 : index
    %6 = vector.load %arg4[%c0_5, %c0_6] : memref<8x16xf32, #tpu.memory_space<vmem>>, vector<8x16xf32>
    tpu.vector_store %arg4[%c0_5, %c0_6], %5 {strides = array<i32>} : memref<8x16xf32, #tpu.memory_space<vmem>>, vector<8x16xf32>,
    %cst_7 = arith.constant dense<0xFF800000> : vector<8xf32>
    %7 = vector.multi_reduction <maximumf>, %5, %cst_7 [1] : vector<8x16xf32> to vector<8xf32>
    %8 = vector.shape_cast %7 : vector<8xf32> to vector<8x1xf32>
    %9 = vector.broadcast %8 : vector<8x1xf32> to vector<8x16xf32>
    %10 = arith.subf %5, %9 : vector<8x16xf32>
    %11 = math.exp %10 : vector<8x16xf32>
    %cst_8 = arith.constant dense<0.000000e+00> : vector<8xf32>
    %12 = vector.multi_reduction <add>, %11, %cst_8 [1] : vector<8x16xf32> to vector<8xf32>
    %13 = vector.shape_cast %12 : vector<8xf32> to vector<8x1xf32>
    %14 = math.log %13 : vector<8x1xf32>
    %15 = arith.addf %8, %14 : vector<8x1xf32>
    %16 = vector.broadcast %15 : vector<8x1xf32> to vector<8x16xf32>
    %17 = arith.subf %5, %16 : vector<8x16xf32>
    %c0_9 = arith.constant 0 : index
    %c0_10 = arith.constant 0 : index
    %18 = vector.load %arg5[%c0_9, %c0_10] : memref<8x16xf32, #tpu.memory_space<vmem>>, vector<8x16xf32>
    tpu.vector_store %arg5[%c0_9, %c0_10], %17 {strides = array<i32>} : memref<8x16xf32, #tpu.memory_space<vmem>>, vector<8x16xf32>,
    return
  }
  func.func @transform_0(%arg0: i32) -> (i32, i32) {
    %c0_i32 = arith.constant 0 : i32
    %c0_i32_0 = arith.constant 0 : i32
    return %arg0, %c0_i32 : i32, i32
  }
  func.func @transform_1(%arg0: i32) -> (i32, i32) {
    %c0_i32 = arith.constant 0 : i32
    %c0_i32_0 = arith.constant 0 : i32
    %c0_i32_1 = arith.constant 0 : i32
    return %c0_i32, %c0_i32_0 : i32, i32
  }
  func.func @transform_2(%arg0: i32) -> (i32, i32) {
    %c0_i32 = arith.constant 0 : i32
    %c0_i32_0 = arith.constant 0 : i32
    %c0_i32_1 = arith.constant 0 : i32
    return %c0_i32, %c0_i32_0 : i32, i32
  }
  func.func @transform_3(%arg0: i32) -> (i32, i32) {
    %c0_i32 = arith.constant 0 : i32
    %c0_i32_0 = arith.constant 0 : i32
    return %arg0, %c0_i32 : i32, i32
  }
  func.func @transform_4(%arg0: i32) -> (i32, i32) {
    %c0_i32 = arith.constant 0 : i32
    %c0_i32_0 = arith.constant 0 : i32
    return %arg0, %c0_i32 : i32, i32
  }
}

</mosaic_0001>

<bundles_post_ra>
// kernel: categorical_forward.1
= control target key start
LH: loop header
LB: loop body
LE: loop exit
PB: predicated region body
PF: predicated region fallthrough
CT: control target
= control target key end

     0   :  { %10 = vsyncpa [#allocation3], 0  ;;  %v218_v1 = vmov 0.0   ;;  %vm219_vm0 = vmmov 0   ;;  %s275_s0 = inlined_call_operand.vmem [shape: f32[8,32], index: 0, kind: input, shape index: {}]   ;;  %s276_s1 = inlined_call_operand.vmem [shape: f32[32,16], index: 1, kind: input, shape index: {}]   ;;  %s277_s2 = inlined_call_operand.vmem [shape: f32[1,16], index: 2, kind: input, shape index: {}]   ;;  %s278_s3 = inlined_call_operand.hbm [shape: f32[8,16], index: 3, kind: output, shape index: {0}]   ;;  %s279_s4 = inlined_call_operand.hbm [shape: f32[8,16], index: 4, kind: output, shape index: {1}]  }
   0x1   :  { %v22_v0 = vld [vmem:[%s276_s1 + $0x18] sm:$0xff]  ;;  %155 = vmatprep.subr.mxu0 %v218_v1  ;;  %v21_v2 = vld [vmem:[%s276_s1 + $0x10] sm:$0xff]  ;;  %163 = vmatprep.mubr.msk.f32.mxu0 %vm219_vm0, %v218_v1 }
   0x2   :  { %156 = vmatpush3.msra.mxu0 %v22_v0 }
   0x3   :  { %11 = vsyncpa [#allocation5], 0  ;;  %157 = vmatprep.subr.mxu0 %v218_v1  ;;  %v20_v3 = vld [vmem:[%s276_s1 + $0x8] sm:$0xff]  ;;  %v19_v4 = vld [vmem:[%s276_s1] sm:$0xff]  ;;  %vm30_vm1 = vcmask 261120   ;;  %vm104_vm2 = vcmask 130048  }
   0x4   :  { %158 = vmatpush3.msra.mxu0 %v21_v2  ;;  %v18_v5 = vld [vmem:[%s275_s0] sm:$0xff]  ;;  %s220_s0 = smov [#allocation2]  }
   0x5   :  { %159 = vmatprep.subr.mxu0 %v218_v1  ;;  %v148_v6 = vld [vmem:[%s277_s2] ss:$0 sm:$0xff]  ;;  %s126_s1 = sshll.u32 %s220_s0, 4  ;;  %s127_s1 = int_to_ptr.vmem [resolvable:$true] %s126_s1 }
   0x6   :  { %160 = vmatpush3.msra.mxu0 %v20_v3  ;;  %s174_s2 = scalar_lea.vmem %s127_s1, 128  ;;  %p179_p1 = scmp.lt.s32.totalorder %s127_s1, %s127_s1 }
   0x7   :  { %161 = vmatprep.subr.mxu0 %v218_v1  ;;  %p175_p0 = scmp.ne.s32.totalorder %s127_s1, %s174_s2  ;;  %p180_p2 = scmp.lt.s32.totalorder %s174_s2, %s174_s2 }
   0x8   :  { %162 = vmatpush3.msra.mxu0 %v19_v4 }
   0x9   :  { %164 = vmatmul.mubr.msk.f32.vlgmr.msra.gmra.mxu0 %vm30_vm1, %v18_v5  ;;  %p181_p3 = por %p180_p2, %p179_p1 }
   0xb   :  { %p182_p4 = pnand %p181_p3, %p175_p0 }
  0xc9   :  { %v100_v7 = vpop.f32.mrf.mxu0 }
  0xca   :  { %v101_v8 = vadd.f32 %v148_v6, %v100_v7 }
  0xcb   :  { %v165_v9 = vpop.f32.mrf.mxu0 }
  0xcc   :  { %v106_v10 = vsel %vm104_vm2, %v101_v8, -inf  ;;  %105 = vst.msk [vmem:[#allocation2] sm:$0xff] %vm104_vm2, %v101_v8 }
  0xcd   :  { %107 = vmax.xlane.f32.xlu0 %v106_v10 }
 0x156   :  { %v108_v11 = vpop.xlane.xlu0 %107 }
 0x157   :  { %v109_v12 = vsub.f32 %v101_v8, %v108_v11 }
 0x159   :  { %v110_v13 = vmul.f32 1.442695, %v109_v12 }
 0x15b   :  { %170 = vpow2.f32 %v110_v13 }
 0x168   :  { %v171_v14 = vpop.eup %170 }
 0x169   :  { %v112_v15 = vsel %vm104_vm2, %v171_v14, 0.0 }
 0x16a   :  { %113 = vadd.xlane.f32.xlu0 %v112_v15 }
 0x16b   :  { %185 = shalt.err (!%p182_p4)
}
 0x16c   :  { %129 = dma.vmem_to_hbm [thread:$0]  %s127_s1, 128, %s278_s3, [#allocation3]  }
 0x16d   :  { %s221_s29 = smov [#allocation4]  }
 0x16e   :  { %s136_s30 = sshll.u32 %s221_s29, 4  ;;  %s137_s30 = int_to_ptr.vmem [resolvable:$true] %s136_s30 }
 0x16f   :  { %s194_s5 = scalar_lea.vmem %s137_s30, 128  ;;  %p199_p6 = scmp.lt.s32.totalorder %s137_s30, %s137_s30 }
 0x170   :  { %p195_p5 = scmp.ne.s32.totalorder %s137_s30, %s194_s5  ;;  %p200_p7 = scmp.lt.s32.totalorder %s194_s5, %s194_s5 }
 0x172   :  { %p201_p8 = por %p200_p7, %p199_p6 }
 0x174   :  { %p202_p9 = pnand %p201_p8, %p195_p5 }
 0x1f3   :  { %v114_v16 = vpop.xlane.xlu0 %113 }
 0x1f4   :  { %172 = vlog2.f32 %v114_v16 }
 0x201   :  { %v173_v17 = vpop.eup %172 }
 0x202   :  { %v116_v18 = vmul.f32 0.6931472, %v173_v17 }
 0x204   :  { %v117_v19 = vadd.f32 %v116_v18, %v108_v11 }
 0x206   :  { %v118_v20 = vsub.f32 %v101_v8, %v117_v19 }
 0x208   :  { %119 = vst.msk [vmem:[#allocation4] sm:$0xff] %vm104_vm2, %v118_v20 }
 0x209   :  { %205 = shalt.err (!%p202_p9)
}
 0x20a   :  { %139 = dma.vmem_to_hbm [thread:$0]  %s137_s30, 128, %s279_s4, [#allocation5]  }
 0x20b   :  { %214 = dma.done.wait [#allocation3], 128  }
 0x20c   :  { %215 = vsyncadd [#allocation3], 4294967168 }
 0x20d   :  { %216 = dma.done.wait [#allocation5], 128  }
 0x20e   :  { %217 = vsyncadd [#allocation5], 4294967168 }
 0x20f   :  { %146 = vsyncpa [#allocation3], 1 }
 0x210   :  { %147 = vsyncpa [#allocation5], 1 }

</bundles_post_ra>
